<compile_context>
chip_gen: v7x
topology: tpu7x:2x2x1
jax: 0.10.0
libtpu: 0.0.40
codegen_flags: <defaults>
</compile_context>

<pallas_src>
import jax
import jax.numpy as jnp
from jax import lax
from jax.experimental import pallas as pl
from jax.experimental.pallas import tpu as pltpu

# Encoder(input_size=4) channel counts
C0, C1, C2 = 4, 3, 6
NEG_SLOPE = 0.01  # nn.LeakyReLU default negative_slope


def _round_up(v, m):
    return ((v + m - 1) // m) * m


def _batch_block(n):
    """Batch elements per grid step: fatten blocks for large N, but keep >=2
    grid steps so the 'parallel' axis can shard across v7x's two TensorCores."""
    target = max(1, n // 2)
    for cand in range(target, 0, -1):
        if n % cand == 0:
            return cand
    return 1


def encoder_kernel(w1_ref, b1_ref, w2_ref, b2_ref, x_ref, out_ref):
    # w1_ref: (C0*H, P1)  block-banded conv1 weight, zero-padded to P1 lanes
    # b1_ref: (1, P1)
    # w2_ref: (P1, P2)    block-banded conv2 weight (rows >= C1*H are zero)
    # b2_ref: (1, P2)
    # x_ref:  (BB, W, C0*H)  activations, lanes = channel-major (c*H + h)
    # out_ref:(BB, W, C2*H)  final module layout -> permute folded into kernel
    def leaky(v):
        return jnp.where(v >= 0, v, NEG_SLOPE * v)

    w1 = w1_ref[...]
    b1 = b1_ref[...]
    w2 = w2_ref[...]
    b2 = b2_ref[...]
    bb = x_ref.shape[0]
    c2h = out_ref.shape[-1]

    for b in range(bb):  # static, unrolled over batch elements in this block
        x = x_ref[b]                                                # (W, C0*H)
        y1 = leaky(jnp.dot(x, w1, preferred_element_type=jnp.float32) + b1)
        y2 = leaky(jnp.dot(y1, w2, preferred_element_type=jnp.float32) + b2)
        out_ref[b] = y2[:, :c2h]                                    # (W, C2*H)


def _block_banded(w_taps, H):
    # w_taps: (Cout, Cin, 3) conv taps -> (Cin*H, Cout*H) block-banded matrix:
    #   y[:, o*H + ho] = sum_{i,hi} x[:, i*H + hi] * W[i*H + hi, o*H + ho]
    # reproduces PyTorch's (3,1) cross-correlation with padding (1,0) along H,
    # i.e. W[i*H+hi, o*H+ho] = w_taps[o, i, k] where hi = ho + k - 1.
    eyes = jnp.stack([jnp.eye(H, k=1, dtype=jnp.float32),    # tap k=0: hi=ho-1
                      jnp.eye(H, k=0, dtype=jnp.float32),    # tap k=1: hi=ho
                      jnp.eye(H, k=-1, dtype=jnp.float32)])  # tap k=2: hi=ho+1
    w4 = jnp.einsum('oik,kpq->ipoq', w_taps.astype(jnp.float32), eyes)
    ci, hh, co, _ = w4.shape
    return w4.reshape(ci * hh, co * hh)


@jax.jit
def encoder_forward(x, w1, b1, w2, b2):
    # x: (N, C0, H, W); w1: (C1, C0, 3, 1); b1: (C1,); w2: (C2, C1, 3, 1); b2: (C2,)
    N, c0, H, W = x.shape
    c1 = w1.shape[0]
    c2 = w2.shape[0]
    P1 = _round_up(c1 * H, 128)
    P2 = _round_up(c2 * H, 128)

    # Fused block-banded weights, zero-padded to lane-dense widths (128-mult).
    w1_blk = _block_banded(w1[..., 0], H)                        # (C0*H, C1*H)
    w2_blk = _block_banded(w2[..., 0], H)                        # (C1*H, C2*H)
    w1p = jnp.pad(w1_blk, ((0, 0), (0, P1 - c1 * H)))            # (C0*H, P1)
    w2p = jnp.pad(w2_blk, ((0, P1 - c1 * H), (0, P2 - c2 * H)))  # (P1, P2)
    b1p = jnp.pad(jnp.repeat(b1, H), (0, P1 - c1 * H))[None, :]  # (1, P1)
    b2p = jnp.pad(jnp.repeat(b2, H), (0, P2 - c2 * H))[None, :]  # (1, P2)

    # Activation layout (n, w, c*H): conv becomes a single matmul per layer and
    # the kernel output is directly the module's (n, w, c*h) result.
    x_lanes = jnp.transpose(x, (0, 3, 1, 2)).reshape(N, W, c0 * H)

    bb = _batch_block(N)
    grid = (N // bb,)

    out = pl.pallas_call(
        encoder_kernel,
        out_shape=jax.ShapeDtypeStruct((N, W, c2 * H), jnp.float32),
        grid=grid,
        in_specs=[
            pl.BlockSpec((c0 * H, P1), lambda n: (0, 0)),
            pl.BlockSpec((1, P1), lambda n: (0, 0)),
            pl.BlockSpec((P1, P2), lambda n: (0, 0)),
            pl.BlockSpec((1, P2), lambda n: (0, 0)),
            pl.BlockSpec((bb, W, c0 * H), lambda n: (n, 0, 0)),
        ],
        out_specs=pl.BlockSpec((bb, W, c2 * H), lambda n: (n, 0, 0)),
        compiler_params=pltpu.CompilerParams(
            dimension_semantics=("parallel",)),
    )(w1p, b1p, w2p, b2p, x_lanes)
    return out


def encoder_ref(x, w1, b1, w2, b2):
    # Pure-JAX reference matching the PyTorch module.
    def conv(v, w, b):
        y = lax.conv_general_dilated(
            v, w, window_strides=(1, 1), padding=((1, 1), (0, 0)),
            dimension_numbers=('NCHW', 'OIHW', 'NCHW'))
        return y + b[None, :, None, None]

    def leaky(v):
        return jnp.where(v >= 0, v, NEG_SLOPE * v)

    y = leaky(conv(x, w1, b1))
    y = leaky(conv(y, w2, b2))
    n, c, h, w = y.shape
    return y.reshape(n, c * h, w).transpose(0, 2, 1)


if __name__ == "__main__":
    key = jax.random.PRNGKey(0)
    k1, k2, k3, k4, kx = jax.random.split(key, 5)
    N, H, W = 2, 16, 16

    x = jax.random.normal(kx, (N, C0, H, W), jnp.float32)
    # Deterministic synthetic parameters with the module's shapes
    w1 = jax.random.normal(k1, (C1, C0, 3, 1), jnp.float32) * 0.2
    b1 = jax.random.normal(k2, (C1,), jnp.float32) * 0.1
    w2 = jax.random.normal(k3, (C2, C1, 3, 1), jnp.float32) * 0.2
    b2 = jax.random.normal(k4, (C2,), jnp.float32) * 0.1

    out = encoder_forward(x, w1, b1, w2, b2)
    jax.block_until_ready(out)

    ref = encoder_ref(x, w1, b1, w2, b2)
    assert out.shape == (N, W, C2 * H), out.shape
    if not jnp.allclose(out, ref, atol=1e-4, rtol=1e-4):
        raise SystemExit("mismatch vs reference")
    print("KERNEL_OK")
</pallas_src>

<mosaic_0001>
module attributes {stable_mosaic.version = 11 : i64} {
  func.func @encoder_kernel(%arg0: i32, %arg1: memref<64x128xf32, #tpu.memory_space<vmem>>, %arg2: memref<1x128xf32, #tpu.memory_space<vmem>>, %arg3: memref<128x128xf32, #tpu.memory_space<vmem>>, %arg4: memref<1x128xf32, #tpu.memory_space<vmem>>, %arg5: memref<1x16x64xf32, #tpu.memory_space<vmem>>, %arg6: memref<1x16x96xf32, #tpu.memory_space<vmem>>) attributes {dimension_semantics = [#tpu.dimension_semantics<parallel>], iteration_bounds = array<i64: 2>, scalar_prefetch = 0 : i64, scratch_operands = 0 : i64, tpu.core_type = #tpu.core_type<tc>, window_params = [{pipeline_mode = #tpu.pipeline_mode<synchronous>, transform_indices = @transform_0, window_bounds = array<i64: 64, 128>}, {pipeline_mode = #tpu.pipeline_mode<synchronous>, transform_indices = @transform_1, window_bounds = array<i64: 1, 128>}, {pipeline_mode = #tpu.pipeline_mode<synchronous>, transform_indices = @transform_2, window_bounds = array<i64: 128, 128>}, {pipeline_mode = #tpu.pipeline_mode<synchronous>, transform_indices = @transform_3, window_bounds = array<i64: 1, 128>}, {transform_indices = @transform_4, window_bounds = array<i64: 1, 16, 64>}, {transform_indices = @transform_5, window_bounds = array<i64: 1, 16, 96>}]} {
    %c0 = arith.constant 0 : index
    %c0_0 = arith.constant 0 : index
    %0 = vector.load %arg1[%c0, %c0_0] : memref<64x128xf32, #tpu.memory_space<vmem>>, vector<64x128xf32>
    %c0_1 = arith.constant 0 : index
    %c0_2 = arith.constant 0 : index
    %1 = vector.load %arg2[%c0_1, %c0_2] : memref<1x128xf32, #tpu.memory_space<vmem>>, vector<1x128xf32>
    %c0_3 = arith.constant 0 : index
    %c0_4 = arith.constant 0 : index
    %2 = vector.load %arg3[%c0_3, %c0_4] : memref<128x128xf32, #tpu.memory_space<vmem>>, vector<128x128xf32>
    %c0_5 = arith.constant 0 : index
    %c0_6 = arith.constant 0 : index
    %3 = vector.load %arg4[%c0_5, %c0_6] : memref<1x128xf32, #tpu.memory_space<vmem>>, vector<1x128xf32>
    %c0_7 = arith.constant 0 : index
    %c0_8 = arith.constant 0 : index
    %c0_9 = arith.constant 0 : index
    %4 = vector.load %arg5[%c0_7, %c0_8, %c0_9] : memref<1x16x64xf32, #tpu.memory_space<vmem>>, vector<1x16x64xf32>
    %5 = vector.shape_cast %4 : vector<1x16x64xf32> to vector<16x64xf32>
    %cst = arith.constant dense<0.000000e+00> : vector<16x128xf32>
    %6 = tpu.matmul %5, %0, %cst {dimension_numbers = #tpu.dot_dimension_numbers<[1], [0], [0], [1], [0, 0, 1, 1], [], []>} : vector<16x64xf32>, vector<64x128xf32>, vector<16x128xf32> -> vector<16x128xf32>
    %7 = vector.broadcast %1 : vector<1x128xf32> to vector<16x128xf32>
    %8 = arith.addf %6, %7 : vector<16x128xf32>
    %cst_10 = arith.constant 0.000000e+00 : f32
    %9 = vector.broadcast %cst_10 : f32 to vector<16x128xf32>
    %10 = arith.cmpf oge, %8, %9 : vector<16x128xf32>
    %cst_11 = arith.constant 0.00999999977 : f32
    %11 = vector.broadcast %cst_11 : f32 to vector<16x128xf32>
    %12 = arith.mulf %11, %8 : vector<16x128xf32>
    %13 = arith.select %10, %8, %12 : vector<16x128xi1>, vector<16x128xf32>
    %cst_12 = arith.constant dense<0.000000e+00> : vector<16x128xf32>
    %14 = tpu.matmul %13, %2, %cst_12 {dimension_numbers = #tpu.dot_dimension_numbers<[1], [0], [0], [1], [0, 0, 1, 1], [], []>} : vector<16x128xf32>, vector<128x128xf32>, vector<16x128xf32> -> vector<16x128xf32>
    %15 = vector.broadcast %3 : vector<1x128xf32> to vector<16x128xf32>
    %16 = arith.addf %14, %15 : vector<16x128xf32>
    %cst_13 = arith.constant 0.000000e+00 : f32
    %17 = vector.broadcast %cst_13 : f32 to vector<16x128xf32>
    %18 = arith.cmpf oge, %16, %17 : vector<16x128xf32>
    %cst_14 = arith.constant 0.00999999977 : f32
    %19 = vector.broadcast %cst_14 : f32 to vector<16x128xf32>
    %20 = arith.mulf %19, %16 : vector<16x128xf32>
    %21 = arith.select %18, %16, %20 : vector<16x128xi1>, vector<16x128xf32>
    %22 = vector.extract_strided_slice %21 {offsets = [0, 0], sizes = [16, 96], strides = [1, 1]} : vector<16x128xf32> to vector<16x96xf32>
    %c0_15 = arith.constant 0 : index
    %c0_16 = arith.constant 0 : index
    %c0_17 = arith.constant 0 : index
    %23 = vector.load %arg6[%c0_15, %c0_16, %c0_17] : memref<1x16x96xf32, #tpu.memory_space<vmem>>, vector<1x16x96xf32>
    %24 = vector.shape_cast %23 : vector<1x16x96xf32> to vector<16x96xf32>
    %25 = vector.shape_cast %22 : vector<16x96xf32> to vector<1x16x96xf32>
    tpu.vector_store %arg6[%c0_15, %c0_16, %c0_17], %25 {strides = array<i32>} : memref<1x16x96xf32, #tpu.memory_space<vmem>>, vector<1x16x96xf32>,
    return
  }
  func.func @transform_0(%arg0: i32) -> (i32, i32) {
    %c0_i32 = arith.constant 0 : i32
    %c0_i32_0 = arith.constant 0 : i32
    %c0_i32_1 = arith.constant 0 : i32
    return %c0_i32, %c0_i32_0 : i32, i32
  }
  func.func @transform_1(%arg0: i32) -> (i32, i32) {
    %c0_i32 = arith.constant 0 : i32
    %c0_i32_0 = arith.constant 0 : i32
    %c0_i32_1 = arith.constant 0 : i32
    return %c0_i32, %c0_i32_0 : i32, i32
  }
  func.func @transform_2(%arg0: i32) -> (i32, i32) {
    %c0_i32 = arith.constant 0 : i32
    %c0_i32_0 = arith.constant 0 : i32
    %c0_i32_1 = arith.constant 0 : i32
    return %c0_i32, %c0_i32_0 : i32, i32
  }
  func.func @transform_3(%arg0: i32) -> (i32, i32) {
    %c0_i32 = arith.constant 0 : i32
    %c0_i32_0 = arith.constant 0 : i32
    %c0_i32_1 = arith.constant 0 : i32
    return %c0_i32, %c0_i32_0 : i32, i32
  }
  func.func @transform_4(%arg0: i32) -> (i32, i32, i32) {
    %c0_i32 = arith.constant 0 : i32
    %c0_i32_0 = arith.constant 0 : i32
    %c0_i32_1 = arith.constant 0 : i32
    return %arg0, %c0_i32, %c0_i32_0 : i32, i32, i32
  }
  func.func @transform_5(%arg0: i32) -> (i32, i32, i32) {
    %c0_i32 = arith.constant 0 : i32
    %c0_i32_0 = arith.constant 0 : i32
    %c0_i32_1 = arith.constant 0 : i32
    return %arg0, %c0_i32, %c0_i32_0 : i32, i32, i32
  }
}

</mosaic_0001>

<bundles_post_ra>
// kernel: encoder_forward.1
= control target key start
LH: loop header
LB: loop body
LE: loop exit
PB: predicated region body
PF: predicated region fallthrough
CT: control target
= control target key end

     0   :  { %10 = vsyncpa [#allocation3], 0  ;;  %s980_s0 = inlined_call_operand.vmem [shape: f32[64,128], index: 0, kind: input, shape index: {}]   ;;  %s981_s1 = inlined_call_operand.vmem [shape: f32[1,128], index: 1, kind: input, shape index: {}]   ;;  %s982_s2 = inlined_call_operand.vmem [shape: f32[128,128], index: 2, kind: input, shape index: {}]   ;;  %s983_s3 = inlined_call_operand.vmem [shape: f32[1,128], index: 3, kind: input, shape index: {}]   ;;  %s984_s4 = inlined_call_operand.vmem [shape: f32[2,16,64], index: 4, kind: input, shape index: {}]   ;;  %s985_s5 = inlined_call_operand.hbm [shape: f32[2,16,96], index: 5, kind: output, shape index: {}]  }
   0x1   :  { %12 = vsyncpa [#allocation3 + $0x1], 0  ;;  %s797_s18 = smov 0   ;;  %s799_s19 = smov 0  }
   0x2   :  { %s801_s20 = smov 0   ;;  %s803_s21 = smov 0  }
   0x3 LB: > { %s818_s22 = sadd.s32 4294967295, %s762_s21   ;;  %s511_s23 = sadd.s32 4294967294, %s762_s21   ;;  %s762_s21 = sphi %s803_s21, %s991_s21   ;;  %s758_s20 = sphi %s801_s20, %s990_s20   ;;  %s754_s19 = sphi %s799_s19, %s989_s19   ;;  %s750_s18 = sphi %s797_s18, %s988_s18  }
   0x4   : > { %s822_s24 = sadd.s32 1, %s762_s21   ;;  %s135_s25 = sadd.s32 1, %s758_s20 }
   0x5   : > { %s132_s26 = ssub.s32 %s762_s21, %s822_s24  ;;  %p145_p0 = scmp.ne.s32.totalorder %s758_s20, %s754_s19 }
   0x6   : > { %p133_p1 = scmp.eq.s32.totalorder %s132_s26, 0  ;;  %p146_p2 = scmp.eq.s32.totalorder %s818_s22, 1 }
   0x7   : > { %p151_p3 = scmp.ne.s32.totalorder %s754_s19, %s750_s18  ;;  %p152_p4 = scmp.eq.s32.totalorder %s511_s23, 1 }
   0x8   : > { %s833_s27 = scalar_select %p133_p1, %s758_s20, %s135_s25  }
   0x9   : > { %p835_p5 = por %p146_p2, %p145_p0  ;;  %p839_p6 = por %p152_p4, %p151_p3 }
   0xa   : > { %p514_p7 = scmp.ge.s32.totalorder %s762_s21, 1  ;;  %p190_p8 = scmp.lt.s32.totalorder %s762_s21, 3 }
   0xc   : > { %p191_p9 = pnand %p514_p7, %p190_p8 }
   0xd   : > { %v223_v0 = vld [vmem:[%s980_s0] sm:$0xff] (!%p191_p9)  ;;  %v224_v1 = vld [vmem:[%s980_s0 + $0x8] sm:$0xff] (!%p191_p9)  ;;  %v225_v2 = vld [vmem:[%s980_s0 + $0x10] sm:$0xff] (!%p191_p9)  ;;  %p218_p10 = scmp.lt.s32.totalorder (!%p191_p9), %s818_s22, 1  ;;  %vm257_vm0 = vcmask (!%p191_p9), 523264   ;;  %s215_s12 = sand.u32 (!%p191_p9), 1, %s754_s19  }
   0xe   : > { %194 = sbr.rel (%p191_p9) target bundleno = 484 (0x1e4), region = 40  ;;  %v611_v3 = vpack.c.bf16 (!%p191_p9), %v224_v1, %v223_v0  ;;  %v226_v4 = vld [vmem:[%s980_s0 + $0x18] sm:$0xff] (!%p191_p9)  ;;  %v227_v6 = vld [vmem:[%s980_s0 + $0x20] sm:$0xff] (!%p191_p9)  ;;  %v228_v7 = vld [vmem:[%s980_s0 + $0x28] sm:$0xff] (!%p191_p9)  ;;  %s515_s14 = sshll.u32 (!%p191_p9), %s215_s12, 4  ;;  %vm432_vm4 = vcmask (!%p191_p9), 785408  }
   0xf   : > { %v615_v5 = vpack.c.bf16 (!%p191_p9), %v226_v4, %v225_v2  ;;  %v232_v8 = vld [vmem:[%s982_s2] sm:$0xff] (!%p191_p9)  ;;  %v233_v9 = vld [vmem:[%s982_s2 + $0x8] sm:$0xff] (!%p191_p9)  ;;  %v234_v10 = vld [vmem:[%s982_s2 + $0x10] sm:$0xff] (!%p191_p9)  ;;  %v619_v14 = vpack.c.bf16 (!%p191_p9), %v228_v7, %v227_v6  ;;  %s217_s23 = scalar_lea.vmem (!%p191_p9), [#allocation2], %s515_s14  ;;  %s528_s26 = sshll.u32 (!%p191_p9), %s818_s22, 8 }
  0x10   : > { %612 = vmatprep.subr.bf16.mxu0 (!%p191_p9), %v611_v3  ;;  %v235_v11 = vld [vmem:[%s982_s2 + $0x18] sm:$0xff] (!%p191_p9)  ;;  %v627_v12 = vpack.c.bf16 (!%p191_p9), %v233_v9, %v232_v8  ;;  %v236_v15 = vld [vmem:[%s982_s2 + $0x20] sm:$0xff] (!%p191_p9)  ;;  %v237_v16 = vld [vmem:[%s982_s2 + $0x28] sm:$0xff] (!%p191_p9)  ;;  %s449_s25 = sshll.u32 (!%p191_p9), %s217_s23, 4  ;;  %s935_s30 = scalar_lea.hbm (!%p191_p9), %s985_s5, %s528_s26  ;;  %s937_s25 = int_to_ptr.vmem [resolvable:$true] %s449_s25 }
  0x11   : > { %614 = vmatpush3.bf16.msra.mxu0 (!%p191_p9), %v611_v3  ;;  %v631_v13 = vpack.c.bf16 (!%p191_p9), %v235_v11, %v234_v10  ;;  %v229_v17 = vld [vmem:[%s980_s0 + $0x30] sm:$0xff] (!%p191_p9)  ;;  %v230_v18 = vld [vmem:[%s980_s0 + $0x38] sm:$0xff] (!%p191_p9)  ;;  %v635_v20 = vpack.c.bf16 (!%p191_p9), %v237_v16, %v236_v15  ;;  %v240_v25 = vld [vmem:[%s982_s2 + $0x40] sm:$0xff] (!%p191_p9)  ;;  %s700_s6 = scalar_lea.vmem (!%p191_p9), %s937_s25, 256  ;;  %s764_s7 = smov (!%p191_p9), [#allocation2]  }
  0x12   : > { %616 = vmatprep.subr.bf16.mxu0 (!%p191_p9), %v615_v5  ;;  %628 = vmatprep.subr.bf16.mxu1 (!%p191_p9), %v627_v12  ;;  %v623_v21 = vpack.c.bf16 (!%p191_p9), %v230_v18, %v229_v17  ;;  %v238_v22 = vld [vmem:[%s982_s2 + $0x30] sm:$0xff] (!%p191_p9)  ;;  %v239_v23 = vld [vmem:[%s982_s2 + $0x38] sm:$0xff] (!%p191_p9)  ;;  %v241_v26 = vld [vmem:[%s982_s2 + $0x48] sm:$0xff] (!%p191_p9)  ;;  %p701_p11 = scmp.ne.s32.totalorder (!%p191_p9), %s937_s25, %s700_s6  ;;  %s704_s8 = sshll.u32 (!%p191_p9), %s764_s7, 4  ;;  %s705_s8 = int_to_ptr.vmem [resolvable:$false] %s704_s8 }
  0x13   : > { %630 = vmatpush3.bf16.msra.mxu1 (!%p191_p9), %v627_v12  ;;  %v639_v24 = vpack.c.bf16 (!%p191_p9), %v239_v23, %v238_v22  ;;  %v643_v28 = vpack.c.bf16 (!%p191_p9), %v241_v26, %v240_v25  ;;  %v242_v29 = vld [vmem:[%s982_s2 + $0x50] sm:$0xff] (!%p191_p9)  ;;  %v243_v30 = vld [vmem:[%s982_s2 + $0x58] sm:$0xff] (!%p191_p9)  ;;  %v244_v32 = vld [vmem:[%s982_s2 + $0x60] sm:$0xff] (!%p191_p9)  ;;  %s706_s9 = scalar_lea.vmem (!%p191_p9), %s705_s8, 512  ;;  %p707_p0 = scmp.lt.s32.totalorder (!%p191_p9), %s937_s25, %s705_s8 }
  0x14   : > { %632 = vmatprep.subr.bf16.mxu1 (!%p191_p9), %v631_v13  ;;  %v647_v31 = vpack.c.bf16 (!%p191_p9), %v243_v30, %v242_v29  ;;  %v245_v33 = vld [vmem:[%s982_s2 + $0x68] sm:$0xff] (!%p191_p9)  ;;  %v246_v35 = vld [vmem:[%s982_s2 + $0x70] sm:$0xff] (!%p191_p9)  ;;  %v247_v36 = vld [vmem:[%s982_s2 + $0x78] sm:$0xff] (!%p191_p9)  ;;  %p702_p12 = pnand (!%p191_p9), %p701_p11, %p835_p5  ;;  %p708_p1 = scmp.lt.s32.totalorder (!%p191_p9), %s706_s9, %s700_s6 }
  0x15   : > { %s219_s17 = scalar_select %p218_p10, %s818_s22, 1  ;;  %618 = vmatpush3.bf16.msra.mxu0 %v615_v5  ;;  %v651_v34 = vpack.c.bf16 %v245_v33, %v244_v32  ;;  %v655_v37 = vpack.c.bf16 %v247_v36, %v246_v35  ;;  %v518_v38 = vld [vmem:[%s981_s1] ss:$0 sm:$0xff] }
  0x16   : > { %620 = vmatprep.subr.bf16.mxu0 %v619_v14  ;;  %v521_v47 = vld [vmem:[%s983_s3] ss:$0 sm:$0xff]  ;;  %s939_s22 = scalar_lea.sflag [#allocation3], %s215_s12  ;;  %p703_p13 = pneg %p702_p12 }
  0x17   : > { %s527_s10 = sshll.u32 %s219_s17, 4  ;;  %634 = vmatpush3.bf16.msra.mxu1 %v631_v13  ;;  %p709_p2 = por %p708_p1, %p707_p0 }
  0x18   : > { %s222_s13 = scalar_lea.vmem %s984_s4, %s527_s10  ;;  %636 = vmatprep.subr.bf16.mxu1 %v635_v20 }
  0x19   : > { %v249_v19 = vld [vmem:[%s222_s13] sm:$0xff]  ;;  %622 = vmatpush3.bf16.msra.mxu0 %v619_v14  ;;  %v250_v27 = vld [vmem:[%s222_s13 + $0x8] sm:$0xff]  ;;  %p710_p3 = pnand %p709_p2, %p703_p13 }
  0x1a   : > { %573 = vmatprep.mubr.msk.f32.mxu0 %vm257_vm0, %v249_v19  ;;  %624 = vmatprep.subr.bf16.mxu0 %v623_v21 }
  0x1b   : > { %638 = vmatpush3.bf16.msra.mxu1 %v635_v20 }
  0x1c   : > { %640 = vmatprep.subr.bf16.mxu1 %v639_v24 }
  0x1d   : > { %626 = vmatpush3.bf16.msra.mxu0 %v623_v21 }
  0x1f   : > { %642 = vmatpush3.bf16.msra.mxu1 %v639_v24 }
  0x20   : > { %574 = vmatmul.mubr.msk.f32.vlgmr.msra.gmra.mrb[0].mxu0 %vm257_vm0, %v250_v27  ;;  %644 = vmatprep.subr.bf16.mxu1 %v643_v28 }
  0x23   : > { %646 = vmatpush3.bf16.msra.mxu1 %v643_v28 }
  0x24   : > { %648 = vmatprep.subr.bf16.mxu1 %v647_v31 }
  0x27   : > { %650 = vmatpush3.bf16.msra.mxu1 %v647_v31 }
  0x28   : > { %652 = vmatprep.subr.bf16.mxu1 %v651_v34 }
  0x2b   : > { %654 = vmatpush3.bf16.msra.mxu1 %v651_v34 }
  0x2c   : > { %656 = vmatprep.subr.bf16.mxu1 %v655_v37 }
  0x2f   : > { %658 = vmatpush3.bf16.msra.mxu1 %v655_v37 }
  0xf3   : > { %v575_v39 = vpop.f32.mrb[0].mxu0 }
  0xf4   : > { %v336_v40 = vadd.f32 %v575_v39, %v518_v38  ;;  %v330_v41 = vpop.f32.mrb[1].mxu0 }
  0xf5   : > { %v331_v42 = vadd.f32 %v518_v38, %v330_v41 }
  0xf6   : > { %v342_v43 = vmul.f32 0.01, %v336_v40  ;;  %vm340_vm2 = vcmp.ge.f32.partialorder %v336_v40, 0.0 }
  0xf7   : > { %vm339_vm1 = vcmp.ge.f32.partialorder %v331_v42, 0.0  ;;  %v341_v44 = vmul.f32 0.01, %v331_v42 }
  0xf8   : > { %v344_v46 = vsel %vm340_vm2, %v336_v40, %v342_v43 }
  0xf9   : > { %v343_v45 = vsel %vm339_vm1, %v331_v42, %v341_v44 }
  0xfa   : > { %608 = vmatprep.mubr.f32.mxu1 %v343_v45 }
  0xfb   : > { %609 = vmatmul.mubr.f32.vlgmr.msra.gmra.mrb[0].mxu1 %v344_v46 }
 0x1ce   : > { %v610_v48 = vpop.f32.mrb[0].mxu1 }
 0x1cf   : > { %v423_v49 = vadd.f32 %v610_v48, %v521_v47  ;;  %v417_v50 = vpop.f32.mrb[1].mxu1 }
 0x1d0   : > { %v418_v51 = vadd.f32 %v521_v47, %v417_v50 }
 0x1d1   : > { %vm427_vm3 = vcmp.ge.f32.partialorder %v423_v49, 0.0  ;;  %v429_v52 = vmul.f32 0.01, %v423_v49 }
 0x1d2   : > { %vm426_vm5 = vcmp.ge.f32.partialorder %v418_v51, 0.0  ;;  %v428_v53 = vmul.f32 0.01, %v418_v51 }
 0x1d3   : > { %v431_v54 = vsel %vm427_vm3, %v423_v49, %v429_v52 }
 0x1d4   : > { %434 = vst.msk [vmem:[%s217_s23 + $0x8] sm:$0xff] %vm432_vm4, %v431_v54  ;;  %v430_v55 = vsel %vm426_vm5, %v418_v51, %v428_v53 }
 0x1d5   : > { %433 = vst.msk [vmem:[%s217_s23] sm:$0xff] %vm432_vm4, %v430_v55 }
 0x1d6   : > { %713 = shalt.err (!%p710_p3)
}
 0x1d7   : > { %s714_s10 = scalar_lea.hbm %s935_s30, 256  ;;  %s718_s14 = scalar_lea.hbm %s985_s5, 512 }
 0x1d8   : > { %p715_p4 = scmp.ne.s32.totalorder %s935_s30, %s714_s10  ;;  %p719_p9 = scmp.lt.u32.totalorder %s935_s30, %s985_s5 }
 0x1d9   : > { %p720_p10 = scmp.lt.u32.totalorder %s718_s14, %s714_s10  ;;  %p722_p12 = scmp.lt.u32.totalorder %s714_s10, %s935_s30 }
 0x1da   : > { %p716_p7 = pnand %p715_p4, %p835_p5 }
 0x1db   : > { %p721_p11 = por %p720_p10, %p719_p9 }
 0x1dc   : > { %p717_p8 = pneg %p716_p7 }
 0x1dd   : > { %p723_p13 = por %p722_p12, %p721_p11 }
 0x1df   : > { %p724_p0 = pnand %p723_p13, %p717_p8 }
 0x1e1   : > { %727 = shalt.err (!%p724_p0)
}
 0x1e2   : > { %s765_s23 = smov 128   ;;  %s766_s26 = smov 8  }
 0x1e3   : > { %659 = dma.vmem_to_hbm [thread:$0]  (%p835_p5), %s937_s25, 256, %s935_s30, %s939_s22, %s765_s23, %s765_s23, %s766_s26  }
 0x1e4 PF: > { %p665_p1 = scmp.ge.s32.totalorder %s762_s21, 2  ;;  %s464_s13 = sand.u32 1, %s750_s18  }
 0x1e5   : > { %s465_s17 = scalar_lea.sflag [#allocation3], %s464_s13 }
 0x1e6   : > { %p662_p2 = pnand %p665_p1, %p839_p6 }
 0x1e8   : > { %745 = dma.done.wait (!%p662_p2), %s465_s17, 256  }
 0x1e9   : > { %747 = vsyncadd (!%p662_p2), %s465_s17, 4294967040  ;;  %p15_p3 = scmp.ge.s32.totalorder %s822_s24, 4   ;;  %s988_s18 = smov %s754_s19 }
 0x1ea   : > { %s989_s19 = smov %s758_s20  ;;  %s990_s20 = smov %s833_s27 }
 0x1eb   : > { %s991_s21 = smov %s822_s24  ;;  %17 = sbr.rel (!%p15_p3) target bundleno = 3 (0x3), region = 75 }
 0x1f2   :  { %470 = vsyncpa [#allocation3], 1 }
 0x1f3   :  { %472 = vsyncpa [#allocation3 + $0x1], 1 }

</bundles_post_ra>
